<compile_context>
chip_gen: v6e
topology: v6e:2x2x1
jax: 0.10.0
libtpu: 0.0.40
codegen_flags: <defaults>
</compile_context>

<pallas_src>
import functools

import jax
import jax.numpy as jnp
from jax.experimental import pallas as pl
from jax.experimental.pallas import tpu as pltpu

LANE = 128


def _round_up(v, m):
    return ((v + m - 1) // m) * m


def _vmem_limit_bytes():
    """Generation-aware VMEM budget: ~3/4 of physical capacity.

    v7x (64 MiB physical)  -> 48 MiB
    v5e/v6e (128 MiB)      -> 96 MiB
    Conservative 32 MiB fallback if the query is unavailable.
    """
    try:
        cap = int(pltpu.get_tpu_info().vmem_capacity_bytes)
        return int(max(32 * 1024 * 1024, min(cap * 3 // 4, 96 * 1024 * 1024)))
    except Exception:
        return 32 * 1024 * 1024


# ---------------------------------------------------------------------------
# Kernel 1: feature transform  Z1 = X @ W1   (bf16 inputs, f32 MXU accumulate)
# ---------------------------------------------------------------------------
def _xw_kernel(x_ref, w_ref, z_ref):
    z_ref[...] = jnp.dot(
        x_ref[...], w_ref[...], preferred_element_type=jnp.float32
    ).astype(z_ref.dtype)


def feature_transform(x, w, *, tm, vmem_limit):
    n, f = x.shape
    c = w.shape[1]
    return pl.pallas_call(
        _xw_kernel,
        out_shape=jax.ShapeDtypeStruct((n, c), jnp.bfloat16),
        grid_spec=pltpu.PrefetchScalarGridSpec(
            num_scalar_prefetch=0,
            grid=(n // tm,),
            in_specs=[
                pl.BlockSpec((tm, f), lambda i: (i, 0)),
                pl.BlockSpec((f, c), lambda i: (0, 0)),   # weight resident
            ],
            out_specs=pl.BlockSpec((tm, c), lambda i: (i, 0)),
        ),
        compiler_params=pltpu.CompilerParams(
            dimension_semantics=("parallel",),
            vmem_limit_bytes=vmem_limit,
        ),
        cost_estimate=pl.CostEstimate(
            flops=2 * n * f * c,
            transcendentals=0,
            bytes_accessed=int((n * f + f * c + n * c) * 2),
        ),
    )(x, w)


# ---------------------------------------------------------------------------
# Kernel 2 (fused layer 1): Z2 = ReLU(Ahat @ Z1 + b1) @ W2
#   grid = (row tiles, contraction tiles); f32 VMEM accumulator; W2 matmul in
#   the k==last epilogue rides the MXU slack of this HBM-bound kernel.
# ---------------------------------------------------------------------------
def _agg_fused_kernel(adj_ref, z_ref, b_ref, w2_ref, out_ref, acc_ref, *,
                      tk, z_resident):
    k = pl.program_id(1)

    @pl.when(k == 0)
    def _():
        acc_ref[...] = jnp.zeros_like(acc_ref)

    if z_resident:
        start = pl.multiple_of(k * tk, tk)
        z_tile = z_ref[pl.ds(start, tk), :]
    else:
        z_tile = z_ref[...]
    acc_ref[...] += jnp.dot(adj_ref[...], z_tile, preferred_element_type=jnp.float32)

    @pl.when(k == pl.num_programs(1) - 1)
    def _():
        h = jnp.maximum(acc_ref[...] + b_ref[...], 0.0).astype(w2_ref.dtype)
        out_ref[...] = jnp.dot(
            h, w2_ref[...], preferred_element_type=jnp.float32
        ).astype(out_ref.dtype)


def aggregate_fused(adj, z, b, w2, *, tm, tk, z_resident, vmem_limit):
    n = adj.shape[0]
    hp = z.shape[1]
    cp = w2.shape[1]
    kern = functools.partial(_agg_fused_kernel, tk=tk, z_resident=z_resident)
    if z_resident:
        z_spec = pl.BlockSpec((n, hp), lambda i, k: (0, 0))      # resident, DMA'd once
        z_bytes = n * hp * 2
    else:
        z_spec = pl.BlockSpec((tk, hp), lambda i, k: (k, 0))     # streamed per k-tile
        z_bytes = (n // tm) * n * hp * 2
    return pl.pallas_call(
        kern,
        out_shape=jax.ShapeDtypeStruct((n, cp), jnp.bfloat16),
        grid_spec=pltpu.PrefetchScalarGridSpec(
            num_scalar_prefetch=0,
            grid=(n // tm, n // tk),
            in_specs=[
                pl.BlockSpec((tm, tk), lambda i, k: (i, k)),     # Ahat tile stream
                z_spec,                                          # Z1
                pl.BlockSpec((1, hp), lambda i, k: (0, 0)),      # b1 (resident)
                pl.BlockSpec((hp, cp), lambda i, k: (0, 0)),     # W2 (resident, fused)
            ],
            out_specs=pl.BlockSpec((tm, cp), lambda i, k: (i, 0)),
            scratch_shapes=[pltpu.VMEM((tm, hp), jnp.float32)],
        ),
        compiler_params=pltpu.CompilerParams(
            dimension_semantics=("parallel", "arbitrary"),
            vmem_limit_bytes=vmem_limit,
        ),
        cost_estimate=pl.CostEstimate(
            flops=2 * n * n * hp + 2 * n * hp * cp,
            transcendentals=0,
            bytes_accessed=int(n * n * 2 + z_bytes + hp * cp * 2 + n * cp * 2),
        ),
    )(adj, z, b, w2)


# ---------------------------------------------------------------------------
# Kernel 3 (layer 2): OUT = Ahat @ Z2 + b2  (f32 out, accumulate in out_ref)
# ---------------------------------------------------------------------------
def _agg_final_kernel(adj_ref, z_ref, b_ref, out_ref, *, tk, z_resident):
    k = pl.program_id(1)

    @pl.when(k == 0)
    def _():
        out_ref[...] = jnp.zeros_like(out_ref)

    if z_resident:
        start = pl.multiple_of(k * tk, tk)
        z_tile = z_ref[pl.ds(start, tk), :]
    else:
        z_tile = z_ref[...]
    out_ref[...] += jnp.dot(adj_ref[...], z_tile, preferred_element_type=jnp.float32)

    @pl.when(k == pl.num_programs(1) - 1)
    def _():
        out_ref[...] += b_ref[...]


def aggregate_final(adj, z, b, *, tm, tk, z_resident, vmem_limit):
    n = adj.shape[0]
    cp = z.shape[1]
    kern = functools.partial(_agg_final_kernel, tk=tk, z_resident=z_resident)
    if z_resident:
        z_spec = pl.BlockSpec((n, cp), lambda i, k: (0, 0))
        z_bytes = n * cp * 2
    else:
        z_spec = pl.BlockSpec((tk, cp), lambda i, k: (k, 0))
        z_bytes = (n // tm) * n * cp * 2
    return pl.pallas_call(
        kern,
        out_shape=jax.ShapeDtypeStruct((n, cp), jnp.float32),
        grid_spec=pltpu.PrefetchScalarGridSpec(
            num_scalar_prefetch=0,
            grid=(n // tm, n // tk),
            in_specs=[
                pl.BlockSpec((tm, tk), lambda i, k: (i, k)),     # Ahat tile stream
                z_spec,                                          # Z2
                pl.BlockSpec((1, cp), lambda i, k: (0, 0)),      # b2 (resident)
            ],
            out_specs=pl.BlockSpec((tm, cp), lambda i, k: (i, 0)),  # revisited over k
        ),
        compiler_params=pltpu.CompilerParams(
            dimension_semantics=("parallel", "arbitrary"),
            vmem_limit_bytes=vmem_limit,
        ),
        cost_estimate=pl.CostEstimate(
            flops=2 * n * n * cp,
            transcendentals=0,
            bytes_accessed=int(n * n * 2 + z_bytes + n * cp * 4),
        ),
    )(adj, z, b)


# ---------------------------------------------------------------------------
# Adjacency: dense D^-1/2 (A + I) D^-1/2 (PyG GCNConv, add_self_loops=True),
# scattered directly into a padded buffer of the requested dtype.
# ---------------------------------------------------------------------------
def normalized_adjacency(edge_index, num_nodes, *, n_pad=None, dtype=jnp.float32):
    if n_pad is None:
        n_pad = num_nodes
    src, dst = edge_index[0], edge_index[1]
    loops = jnp.arange(num_nodes, dtype=src.dtype)
    src = jnp.concatenate([src, loops])
    dst = jnp.concatenate([dst, loops])
    w = jnp.ones(src.shape[0], jnp.float32)
    deg = jnp.zeros((num_nodes,), jnp.float32).at[dst].add(w)
    deg_inv_sqrt = jnp.where(deg > 0, 1.0 / jnp.sqrt(deg), 0.0)
    norm = (deg_inv_sqrt[src] * deg_inv_sqrt[dst] * w).astype(dtype)
    # message flows src -> dst:  out[dst] += norm * x[src]  =>  A[dst, src] += norm
    return jnp.zeros((n_pad, n_pad), dtype).at[dst, src].add(norm)


# ---------------------------------------------------------------------------
# 2-layer GCN forward (PyG GCNConv semantics):
#   H   = ReLU(Ahat @ (X W1) + b1)
#   OUT =       Ahat @ (H W2) + b2
# ---------------------------------------------------------------------------
def gcn_forward(x, edge_index, w1, b1, w2, b2):
    n, f = x.shape
    hidden = w1.shape[1]
    c = w2.shape[1]

    # Node dim: pad to a lane multiple; pick the biggest streaming tile that keeps
    # >=2 row tiles (v7x megacore) once the padded node count is large enough.
    n_pad = _round_up(n, LANE)
    if n_pad >= 1024:
        tile = 512
    elif n_pad >= 512:
        tile = 256
    else:
        tile = 128
    n_pad = _round_up(n_pad, tile)

    # Feature dims padded to 128 lanes: dense vregs / MXU columns, unmasked stores.
    fp = _round_up(f, LANE)
    hp = _round_up(hidden, LANE)
    cp = _round_up(c, LANE)

    vmem_limit = _vmem_limit_bytes()
    # Keep the contraction operand resident when it fits comfortably in VMEM
    # (it is only n_pad x 128 bf16), removing n/tm redundant HBM passes.
    z1_resident = (n_pad * hp * 2) <= (vmem_limit // 4)
    z2_resident = (n_pad * cp * 2) <= (vmem_limit // 4)

    bf = jnp.bfloat16
    # Zero padding is exact: padded adjacency rows/cols are zero, so the bogus
    # ReLU(b1)@W2 values on padded node rows never leak into real outputs, and
    # zero-padded weight/bias columns keep padded feature lanes at zero.
    adj_p = normalized_adjacency(edge_index, n, n_pad=n_pad, dtype=bf)
    x_p = jnp.zeros((n_pad, fp), bf).at[:n, :f].set(x.astype(bf))
    w1_p = jnp.zeros((fp, hp), bf).at[:f, :hidden].set(w1.astype(bf))
    w2_p = jnp.zeros((hp, cp), bf).at[:hidden, :c].set(w2.astype(bf))
    b1_p = jnp.zeros((1, hp), jnp.float32).at[:, :hidden].set(
        jnp.reshape(b1, (1, -1)).astype(jnp.float32))
    b2_p = jnp.zeros((1, cp), jnp.float32).at[:, :c].set(
        jnp.reshape(b2, (1, -1)).astype(jnp.float32))

    # Layer 1 transform, then fused (aggregate + ReLU + layer-2 transform).
    z1 = feature_transform(x_p, w1_p, tm=tile, vmem_limit=vmem_limit)
    z2 = aggregate_fused(adj_p, z1, b1_p, w2_p, tm=tile, tk=tile,
                         z_resident=z1_resident, vmem_limit=vmem_limit)
    # Layer 2 aggregation (f32 output, no scratch).
    out = aggregate_final(adj_p, z2, b2_p, tm=tile, tk=tile,
                          z_resident=z2_resident, vmem_limit=vmem_limit)
    return out[:n, :c]


def glorot(key, shape):
    fan_in, fan_out = shape
    limit = jnp.sqrt(6.0 / (fan_in + fan_out))
    return jax.random.uniform(key, shape, jnp.float32, -limit, limit)


if __name__ == "__main__":
    # Small synthetic graph consistent with the module's forward.
    num_nodes = 16
    num_features = 8
    hidden_channels = 8
    num_classes = 4
    num_edges = 32

    key = jax.random.PRNGKey(0)
    k_x, k_src, k_dst, k_w1, k_w2 = jax.random.split(key, 5)

    x = jax.random.normal(k_x, (num_nodes, num_features), jnp.float32)
    edge_index = jnp.stack(
        [
            jax.random.randint(k_src, (num_edges,), 0, num_nodes),
            jax.random.randint(k_dst, (num_edges,), 0, num_nodes),
        ]
    )

    # GCNConv parameters: weight [in, out], bias [out].
    w1 = glorot(k_w1, (num_features, hidden_channels))
    b1 = jnp.zeros((1, hidden_channels), jnp.float32)
    w2 = glorot(k_w2, (hidden_channels, num_classes))
    b2 = jnp.zeros((1, num_classes), jnp.float32)

    out = gcn_forward(x, edge_index, w1, b1, w2, b2)
    out = jax.block_until_ready(out)

    # Tight reference mirroring the kernel's bf16-input / f32-accumulate math.
    f32 = jnp.float32
    bf = jnp.bfloat16
    a32 = normalized_adjacency(edge_index, num_nodes, dtype=bf).astype(f32)
    x32 = x.astype(bf).astype(f32)
    w1_32 = w1.astype(bf).astype(f32)
    w2_32 = w2.astype(bf).astype(f32)
    z1r = (x32 @ w1_32).astype(bf).astype(f32)
    hr = jnp.maximum(a32 @ z1r + b1, 0.0).astype(bf).astype(f32)
    z2r = (hr @ w2_32).astype(bf).astype(f32)
    ref_bf16 = a32 @ z2r + b2
    assert jnp.allclose(out, ref_bf16, atol=1e-2, rtol=1e-2)

    # Loose sanity check against the pure-f32 module math (semantics preserved).
    a_f32 = normalized_adjacency(edge_index, num_nodes, dtype=f32)
    ref_h = jnp.maximum(a_f32 @ (x @ w1) + b1, 0.0)
    ref_f32 = a_f32 @ (ref_h @ w2) + b2
    assert jnp.allclose(out, ref_f32, atol=1e-1, rtol=1e-1)

    print("KERNEL_OK")
</pallas_src>

<mosaic_0001>
module attributes {stable_mosaic.version = 11 : i64} {
  func.func @_xw_kernel(%arg0: i32, %arg1: memref<128x128xbf16, #tpu.memory_space<vmem>>, %arg2: memref<128x128xbf16, #tpu.memory_space<vmem>>, %arg3: memref<128x128xbf16, #tpu.memory_space<vmem>>) attributes {dimension_semantics = [#tpu.dimension_semantics<parallel>], iteration_bounds = array<i64: 1>, scalar_prefetch = 0 : i64, scratch_operands = 0 : i64, tpu.core_type = #tpu.core_type<tc>, window_params = [{transform_indices = @transform_0, window_bounds = array<i64: 128, 128>}, {pipeline_mode = #tpu.pipeline_mode<synchronous>, transform_indices = @transform_1, window_bounds = array<i64: 128, 128>}, {transform_indices = @transform_2, window_bounds = array<i64: 128, 128>}]} {
    %c0 = arith.constant 0 : index
    %c0_0 = arith.constant 0 : index
    %0 = vector.load %arg1[%c0, %c0_0] : memref<128x128xbf16, #tpu.memory_space<vmem>>, vector<128x128xbf16>
    %c0_1 = arith.constant 0 : index
    %c0_2 = arith.constant 0 : index
    %1 = vector.load %arg2[%c0_1, %c0_2] : memref<128x128xbf16, #tpu.memory_space<vmem>>, vector<128x128xbf16>
    %cst = arith.constant dense<0.000000e+00> : vector<128x128xf32>
    %2 = tpu.matmul %0, %1, %cst {dimension_numbers = #tpu.dot_dimension_numbers<[1], [0], [0], [1], [0, 0, 1, 1], [], []>} : vector<128x128xbf16>, vector<128x128xbf16>, vector<128x128xf32> -> vector<128x128xf32>
    %3 = arith.truncf %2 : vector<128x128xf32> to vector<128x128xbf16>
    %c0_3 = arith.constant 0 : index
    %c0_4 = arith.constant 0 : index
    %4 = vector.load %arg3[%c0_3, %c0_4] : memref<128x128xbf16, #tpu.memory_space<vmem>>, vector<128x128xbf16>
    tpu.vector_store %arg3[%c0_3, %c0_4], %3 {strides = array<i32>} : memref<128x128xbf16, #tpu.memory_space<vmem>>, vector<128x128xbf16>,
    return
  }
  func.func @transform_0(%arg0: i32) -> (i32, i32) {
    %c0_i32 = arith.constant 0 : i32
    %c0_i32_0 = arith.constant 0 : i32
    return %arg0, %c0_i32 : i32, i32
  }
  func.func @transform_1(%arg0: i32) -> (i32, i32) {
    %c0_i32 = arith.constant 0 : i32
    %c0_i32_0 = arith.constant 0 : i32
    %c0_i32_1 = arith.constant 0 : i32
    return %c0_i32, %c0_i32_0 : i32, i32
  }
  func.func @transform_2(%arg0: i32) -> (i32, i32) {
    %c0_i32 = arith.constant 0 : i32
    %c0_i32_0 = arith.constant 0 : i32
    return %arg0, %c0_i32 : i32, i32
  }
}

</mosaic_0001>

<bundles_post_ra>
// kernel: tpu_custom_call.1
= control target key start
LH: loop header
LB: loop body
LE: loop exit
PB: predicated region body
PF: predicated region fallthrough
CT: control target
= control target key end

     0   :  { %7 = vsyncpa [#allocation3], 0  ;;  %s648_s0 = inlined_call_operand.hbm [shape: bf16[128,128], index: 0, kind: input, shape index: {}]   ;;  %s649_s1 = inlined_call_operand.hbm [shape: bf16[128,128], index: 1, kind: input, shape index: {}]   ;;  %s650_s2 = inlined_call_operand.hbm [shape: bf16[128,128], index: 2, kind: output, shape index: {}]  }
   0x1   :  { %8 = vsyncpa [#allocation6], 0 }
   0x2   :  { %9 = vsyncpa [#allocation4], 0  ;;  %s610_s9 = smov [#allocation2]  }
   0x3   :  { %s15_s10 = sshll.u32 %s610_s9, 4  ;;  %s16_s10 = int_to_ptr.vmem [resolvable:$true] %s15_s10 }
   0x4   :  { %s552_s11 = scalar_lea.vmem %s16_s10, 1024  ;;  %p557_p1 = scmp.lt.s32.totalorder %s16_s10, %s16_s10 }
   0x5   :  { %p553_p0 = scmp.ne.s32.totalorder %s16_s10, %s552_s11  ;;  %p558_p2 = scmp.lt.s32.totalorder %s552_s11, %s552_s11 }
   0x7   :  { %p559_p3 = por %p558_p2, %p557_p1 }
   0x9   :  { %p560_p4 = pnand %p559_p3, %p553_p0 }
   0xb   :  { %563 = shalt.err (!%p560_p4)
}
   0xc   :  { %s611_s12 = smov 64   ;;  %s612_s13 = smov 4  }
   0xd   :  { %21 = dma.hbm_to_vmem [thread:$0]  %s648_s0, 1024, %s16_s10, [#allocation3], %s611_s12, %s611_s12, %s612_s13  }
   0xe   :  { %s613_s16 = smov [#allocation5]  }
   0xf   :  { %s27_s17 = sshll.u32 %s613_s16, 4  ;;  %s28_s17 = int_to_ptr.vmem [resolvable:$true] %s27_s17 }
  0x10   :  { %s572_s18 = scalar_lea.vmem %s28_s17, 1024  ;;  %p577_p6 = scmp.lt.s32.totalorder %s28_s17, %s28_s17 }
  0x11   :  { %p573_p5 = scmp.ne.s32.totalorder %s28_s17, %s572_s18  ;;  %p578_p7 = scmp.lt.s32.totalorder %s572_s18, %s572_s18 }
  0x13   :  { %p579_p8 = por %p578_p7, %p577_p6 }
  0x15   :  { %p580_p9 = pnand %p579_p8, %p573_p5 }
  0x17   :  { %583 = shalt.err (!%p580_p9)
}
  0x18   :  { %33 = dma.hbm_to_vmem [thread:$0]  %s649_s1, 1024, %s28_s17, [#allocation6], %s611_s12, %s611_s12, %s612_s13  }
  0x19   :  { %604 = dma.done.wait [#allocation3], 1024  }
  0x1a   :  { %605 = vsyncadd [#allocation3], 4294966272 }
  0x1b   :  { %606 = dma.done.wait [#allocation6], 1024  }
  0x1c   :  { %607 = vsyncadd [#allocation6], 4294966272  ;;  %v528_v0 = vld [vmem:[#allocation5 + $0x38] sm:$0xff]   ;;  %v529_v1 = vld [vmem:[#allocation5 + $0x30] sm:$0xff]   ;;  %s614_s0 = smov [#allocation7]  }
  0x1d   :  { %475 = vmatprep.subr.bf16.mxu0 %v528_v0  ;;  %507 = vmatprep.subr.bf16.mxu1 %v528_v0  ;;  %v530_v2 = vld [vmem:[#allocation5 + $0x28] sm:$0xff]   ;;  %v531_v3 = vld [vmem:[#allocation5 + $0x20] sm:$0xff]   ;;  %v532_v6 = vld [vmem:[#allocation5 + $0x18] sm:$0xff]   ;;  %s351_s1 = sshll.u32 %s614_s0, 4  ;;  %s352_s1 = int_to_ptr.vmem [resolvable:$true] %s351_s1 }
  0x1e   :  { %476 = vmatpush3.bf16.msra.mxu0 %v528_v0  ;;  %515 = vmatpush3.bf16.msra.mxu1 %v528_v0  ;;  %v536_v4 = vld [vmem:[#allocation2] sm:$0xff]   ;;  %v533_v7 = vld [vmem:[#allocation5 + $0x10] sm:$0xff]   ;;  %v534_v8 = vld [vmem:[#allocation5 + $0x8] sm:$0xff]   ;;  %s584_s21 = scalar_lea.vmem %s352_s1, 1024  ;;  %p589_p11 = scmp.lt.s32.totalorder %s352_s1, %s352_s1 }
  0x1f   :  { %477 = vmatprep.subr.bf16.mxu0 %v529_v1  ;;  %508 = vmatprep.subr.bf16.mxu1 %v529_v1  ;;  %v537_v5 = vld [vmem:[#allocation2 + $0x20] sm:$0xff]   ;;  %v538_v10 = vld [vmem:[#allocation2 + $0x8] sm:$0xff]   ;;  %v540_v12 = vld [vmem:[#allocation2 + $0x10] sm:$0xff]   ;;  %p585_p10 = scmp.ne.s32.totalorder %s352_s1, %s584_s21  ;;  %p590_p12 = scmp.lt.s32.totalorder %s584_s21, %s584_s21 }
  0x20   :  { %491 = vmatprep.mubr.bf16.mxu0 %v536_v4  ;;  %499 = vmatprep.mubr.bf16.mxu1 %v537_v5  ;;  %v535_v9 = vld [vmem:[#allocation5] sm:$0xff]   ;;  %v539_v11 = vld [vmem:[#allocation2 + $0x28] sm:$0xff]   ;;  %v541_v13 = vld [vmem:[#allocation2 + $0x30] sm:$0xff]  }
  0x21   :  { %v542_v14 = vld [vmem:[#allocation2 + $0x18] sm:$0xff]   ;;  %p591_p13 = por %p590_p12, %p589_p11 }
  0x22   :  { %478 = vmatpush3.bf16.msra.mxu0 %v529_v1  ;;  %516 = vmatpush3.bf16.msra.mxu1 %v529_v1  ;;  %v543_v15 = vld [vmem:[#allocation2 + $0x38] sm:$0xff]  }
  0x23   :  { %479 = vmatprep.subr.bf16.mxu0 %v530_v2  ;;  %509 = vmatprep.subr.bf16.mxu1 %v530_v2  ;;  %p592_p0 = pnand %p591_p13, %p585_p10 }
  0x26   :  { %480 = vmatpush3.bf16.msra.mxu0 %v530_v2  ;;  %517 = vmatpush3.bf16.msra.mxu1 %v530_v2 }
  0x27   :  { %481 = vmatprep.subr.bf16.mxu0 %v531_v3  ;;  %510 = vmatprep.subr.bf16.mxu1 %v531_v3 }
  0x2a   :  { %482 = vmatpush3.bf16.msra.mxu0 %v531_v3  ;;  %518 = vmatpush3.bf16.msra.mxu1 %v531_v3 }
  0x2b   :  { %483 = vmatprep.subr.bf16.mxu0 %v532_v6  ;;  %511 = vmatprep.subr.bf16.mxu1 %v532_v6 }
  0x2e   :  { %484 = vmatpush3.bf16.msra.mxu0 %v532_v6  ;;  %519 = vmatpush3.bf16.msra.mxu1 %v532_v6 }
  0x2f   :  { %485 = vmatprep.subr.bf16.mxu0 %v533_v7  ;;  %512 = vmatprep.subr.bf16.mxu1 %v533_v7 }
  0x32   :  { %486 = vmatpush3.bf16.msra.mxu0 %v533_v7  ;;  %520 = vmatpush3.bf16.msra.mxu1 %v533_v7 }
  0x33   :  { %487 = vmatprep.subr.bf16.mxu0 %v534_v8  ;;  %513 = vmatprep.subr.bf16.mxu1 %v534_v8 }
  0x36   :  { %488 = vmatpush3.bf16.msra.mxu0 %v534_v8  ;;  %521 = vmatpush3.bf16.msra.mxu1 %v534_v8 }
  0x37   :  { %489 = vmatprep.subr.bf16.mxu0 %v535_v9  ;;  %514 = vmatprep.subr.bf16.mxu1 %v535_v9 }
  0x3a   :  { %490 = vmatpush3.bf16.msra.mxu0 %v535_v9  ;;  %522 = vmatpush3.bf16.msra.mxu1 %v535_v9 }
  0x3d   :  { %492 = vmatmul.mubr.bf16.vlgmr.msra.gmra.mxu0 %v538_v10  ;;  %500 = vmatmul.mubr.bf16.vlgmr.msra.gmra.mxu1 %v539_v11 }
  0x3e   :  { %495 = vmatprep.mubr.bf16.mxu0 %v540_v12  ;;  %503 = vmatprep.mubr.bf16.mxu1 %v541_v13 }
  0x45   :  { %496 = vmatmul.mubr.bf16.gmra.mxu0 %v542_v14  ;;  %504 = vmatmul.mubr.bf16.gmra.mxu1 %v543_v15 }
  0xfd   :  { %v493_v16 = vpop.f32.mrf.mxu0  ;;  %v501_v17 = vpop.f32.mrf.mxu1 }
  0xff   :  { %v203_v18 = vpop.f32.mrf.mxu0  ;;  %v235_v19 = vpop.f32.mrf.mxu1 }
 0x101   :  { %v494_v20 = vpop.f32.mrf.mxu0  ;;  %v502_v21 = vpop.f32.mrf.mxu1 }
 0x102   :  { %v420_v22 = vpack.c.bf16 %v494_v20, %v493_v16  ;;  %v440_v23 = vpack.c.bf16 %v502_v21, %v501_v17 }
 0x103   :  { %v206_v24 = vpop.f32.mrf.mxu0  ;;  %v238_v25 = vpop.f32.mrf.mxu1 }
 0x104   :  { %452 = vst [vmem:[#allocation7 + $0x8] sm:$0xff] %v420_v22   ;;  %456 = vst [vmem:[#allocation7 + $0x28] sm:$0xff] %v440_v23   ;;  %v415_v26 = vpack.c.bf16 %v206_v24, %v203_v18  ;;  %v435_v27 = vpack.c.bf16 %v238_v25, %v235_v19 }
 0x105   :  { %v497_v28 = vpop.f32.mrf.mxu0  ;;  %v505_v29 = vpop.f32.mrf.mxu1 }
 0x106   :  { %416 = vst [vmem:[#allocation7] sm:$0xff] %v415_v26   ;;  %455 = vst [vmem:[#allocation7 + $0x20] sm:$0xff] %v435_v27  }
 0x107   :  { %v219_v30 = vpop.f32.mrf.mxu0  ;;  %v251_v31 = vpop.f32.mrf.mxu1 }
 0x109   :  { %v498_v32 = vpop.f32.mrf.mxu0  ;;  %v506_v33 = vpop.f32.mrf.mxu1 }
 0x10a   :  { %v430_v34 = vpack.c.bf16 %v498_v32, %v497_v28  ;;  %v450_v35 = vpack.c.bf16 %v506_v33, %v505_v29 }
 0x10b   :  { %v222_v36 = vpop.f32.mrf.mxu0  ;;  %v254_v37 = vpop.f32.mrf.mxu1 }
 0x10c   :  { %454 = vst [vmem:[#allocation7 + $0x18] sm:$0xff] %v430_v34   ;;  %458 = vst [vmem:[#allocation7 + $0x38] sm:$0xff] %v450_v35   ;;  %v425_v38 = vpack.c.bf16 %v222_v36, %v219_v30  ;;  %v445_v39 = vpack.c.bf16 %v254_v37, %v251_v31 }
 0x10e   :  { %453 = vst [vmem:[#allocation7 + $0x10] sm:$0xff] %v425_v38   ;;  %457 = vst [vmem:[#allocation7 + $0x30] sm:$0xff] %v445_v39  }
 0x10f   :  { %595 = shalt.err (!%p592_p0)
}
 0x110   :  { %357 = dma.vmem_to_hbm [thread:$0]  %s352_s1, 1024, %s650_s2, [#allocation4], %s611_s12, %s611_s12, %s612_s13  }
 0x111   :  { %608 = dma.done.wait [#allocation4], 1024  }
 0x112   :  { %609 = vsyncadd [#allocation4], 4294966272 }
 0x113   :  { %361 = vsyncpa [#allocation3], 1 }
 0x114   :  { %362 = vsyncpa [#allocation6], 1 }
 0x115   :  { %363 = vsyncpa [#allocation4], 1 }

</bundles_post_ra>
